<compile_context>
chip_gen: v7x
topology: tpu7x:2x2x1
jax: 0.10.0
libtpu: 0.0.40
codegen_flags: <defaults>
</compile_context>

<pallas_src>
import functools
import math

import jax
import jax.numpy as jnp
from jax.experimental import pallas as pl
from jax.experimental.pallas import tpu as pltpu

_LANE = 128
_VMEM_TILE_BUDGET = 24 * 1024 * 1024    # in+out tiles, double-buffered
_VMEM_LIMIT_BYTES = 32 * 1024 * 1024    # <= v7x 64 MiB physical; raises v5e default
_TARGET_STEP_BYTES = 2 * 1024 * 1024    # ~2 MiB of x per grid step


def _cdiv(a, b):
    return -(-a // b)


def _round_up(x, m):
    return _cdiv(x, m) * m


def _lcm(a, b):
    return a * b // math.gcd(a, b)


def _row_align(dtype):
    # sublane packing: f32 -> 8 rows, bf16 -> 16, int8/fp8 -> 32
    itemsize = jnp.dtype(dtype).itemsize
    return max(8, 32 // max(itemsize, 1))


def _apply_activation(x, activation_type):
    if activation_type == "RELU":
        return jnp.maximum(x, 0.0)          # max-with-immediate, no zero tile
    elif activation_type == "TANH":
        return jnp.tanh(x)                  # EUP transcendental
    else:
        raise ValueError(f"Unknown activation_type: {activation_type}")


def _norm_act_kernel(x_ref, mean_ref, inv_std_ref, o_ref, *,
                     activation_type, compute_dtype):
    # x tile: (tb, C); mean/inv_std: (1, C), broadcast over sublanes.
    x = x_ref[...].astype(compute_dtype)
    x = (x - mean_ref[...]) * inv_std_ref[...]
    o_ref[...] = _apply_activation(x, activation_type).astype(o_ref.dtype)


def _act_kernel(x_ref, o_ref, *, activation_type, compute_dtype):
    x = x_ref[...].astype(compute_dtype)
    o_ref[...] = _apply_activation(x, activation_type).astype(o_ref.dtype)


def _choose_tb(rows, row_bytes, row_align):
    """Batch tile: ~_TARGET_STEP_BYTES of x per step, >=2 steps when possible."""
    tb = max(1, _TARGET_STEP_BYTES // max(row_bytes, 1))
    tb = min(tb, max(1, _VMEM_TILE_BUDGET // (4 * max(row_bytes, 1))))
    if tb >= rows:
        # Whole input fits one step; split in two (when there is enough work)
        # so dimension_semantics=("parallel",) can shard across v7x's 2 TCs.
        if rows >= 4 * row_align:
            half = _round_up(_cdiv(rows, 2), row_align)
            tb = half if half < rows else rows
        else:
            tb = rows
    else:
        tb = max(row_align, (tb // row_align) * row_align)
    return tb


class BaseModulePallas:
    """JAX/Pallas port of BaseModule (activation + normalization features)."""

    def __init__(self, activation_type="RELU", reset_type="XAVIER",
                 normalize=None, min_pallas_elements=65536,
                 bf16_compute=True, donate_input=False):
        if activation_type not in ("RELU", "TANH"):
            raise Exception(f"Unknown activation_type: {activation_type}")
        if reset_type not in ("XAVIER", "ZEROS"):
            raise ValueError("Unknown reset type")
        self.activation_type = activation_type
        self.reset_type = reset_type
        self.normalize = normalize
        self.min_pallas_elements = min_pallas_elements
        # bf16 inputs keep the math in bf16 (halves vreg pressure on v6e/v7x);
        # set False on v5e, whose VPU/EUP lack bf16.
        self.bf16_compute = bf16_compute
        # Donate x's HBM buffer to the output (only safe if x is dead after).
        self.donate_input = donate_input
        self.mean = None
        self.std = None
        self.inv_std = None

    def set_normalization_params(self, mean, std):
        mean = jnp.asarray(mean, jnp.float32)
        std = jnp.asarray(std, jnp.float32)
        safe_std = jnp.where(std == 0.0, jnp.ones_like(std), std)
        if self.normalize:
            std = safe_std                      # mirrors reference in-place fixup
        self.mean = mean
        self.std = std
        # Reciprocal hoisted out of the kernel; always taken from the sanitized
        # std so inv_std never contains inf even if `normalize` is toggled later.
        self.inv_std = 1.0 / safe_std

    # ----- tiny / degenerate fallback: let XLA fuse ------------------------
    def _xla_forward(self, x, use_norm):
        y = x.astype(jnp.float32)
        if use_norm:
            y = (y - self.mean.reshape(1, -1)) * self.inv_std.reshape(1, -1)
        return _apply_activation(y, self.activation_type).astype(x.dtype)

    # ----- Pallas path ------------------------------------------------------
    def _pallas_forward(self, x, use_norm):
        batch, feat = x.shape
        dtype = x.dtype
        itemsize = jnp.dtype(dtype).itemsize
        row_align = _row_align(dtype)
        compute_dtype = (jnp.bfloat16
                         if (dtype == jnp.bfloat16 and self.bf16_compute)
                         else jnp.float32)
        n = batch * feat

        # --- choose a lane-dense 2-D view with no padding / no extra passes ---
        if feat % _LANE == 0:
            x2, rows, cols, reps = x, batch, feat, 1
        else:
            c = _lcm(feat, _LANE)
            if n % c == 0:
                # Fold rows into the lane dim: (batch, feat) -> (n//c, c).
                rows, cols, reps = n // c, c, c // feat
                x2 = x.reshape(rows, cols)
            else:
                # Ragged: keep the true feature width (block dim == full array
                # dim is always legal). Masked stores, but zero extra bytes.
                x2, rows, cols, reps = x, batch, feat, 1

        row_bytes = cols * itemsize
        # Rows too wide to tile on the batch axis alone -> let XLA handle it.
        # TODO(synk): add feature-axis tiling for extremely wide feature dims.
        if 4 * row_align * row_bytes > _VMEM_TILE_BUDGET:
            return self._xla_forward(x, use_norm)

        tb = _choose_tb(rows, row_bytes, row_align)
        grid = _cdiv(rows, tb)

        x_spec = pl.BlockSpec((tb, cols), lambda i: (i, 0))
        out_spec = pl.BlockSpec((tb, cols), lambda i: (i, 0))
        out_shape = jax.ShapeDtypeStruct((rows, cols), dtype)
        compiler_params = pltpu.CompilerParams(
            dimension_semantics=("parallel",),      # shard batch over v7x's 2 TCs
            vmem_limit_bytes=_VMEM_LIMIT_BYTES)
        io_aliases = {0: 0} if (self.donate_input and dtype == dtype) else {}

        if use_norm:
            mean_v = self.mean.astype(compute_dtype).reshape(1, feat)
            inv_v = self.inv_std.astype(compute_dtype).reshape(1, feat)
            if reps > 1:
                mean_v = jnp.tile(mean_v, (1, reps))    # tiny: cols elements
                inv_v = jnp.tile(inv_v, (1, reps))
            kernel = functools.partial(_norm_act_kernel,
                                       activation_type=self.activation_type,
                                       compute_dtype=compute_dtype)
            out = pl.pallas_call(
                kernel,
                out_shape=out_shape,
                grid_spec=pltpu.PrefetchScalarGridSpec(
                    num_scalar_prefetch=0,
                    grid=(grid,),
                    in_specs=[
                        x_spec,
                        # mean / inv_std stay VMEM-resident across grid steps
                        pl.BlockSpec((1, cols), lambda i: (0, 0)),
                        pl.BlockSpec((1, cols), lambda i: (0, 0)),
                    ],
                    out_specs=out_spec,
                ),
                compiler_params=compiler_params,
                input_output_aliases=io_aliases,
            )(x2, mean_v, inv_v)
        else:
            # No dummy mean/std DMAs when normalization is off.
            kernel = functools.partial(_act_kernel,
                                       activation_type=self.activation_type,
                                       compute_dtype=compute_dtype)
            out = pl.pallas_call(
                kernel,
                out_shape=out_shape,
                grid_spec=pltpu.PrefetchScalarGridSpec(
                    num_scalar_prefetch=0,
                    grid=(grid,),
                    in_specs=[x_spec],
                    out_specs=out_spec,
                ),
                compiler_params=compiler_params,
                input_output_aliases=io_aliases,
            )(x2)

        if reps > 1:
            out = out.reshape(batch, feat)
        return out

    def __call__(self, x):
        batch, feat = x.shape
        use_norm = bool(self.normalize) and self.mean is not None
        if batch * feat < self.min_pallas_elements:
            return self._xla_forward(x, use_norm)
        return self._pallas_forward(x, use_norm)


if __name__ == "__main__":
    key = jax.random.PRNGKey(0)
    kx, km, ks, kb = jax.random.split(key, 4)

    batch, hidden = 2, 32
    x = jax.random.normal(kx, (batch, hidden), dtype=jnp.float32)
    mean = jax.random.normal(km, (hidden,), dtype=jnp.float32)
    std = jnp.abs(jax.random.normal(ks, (hidden,), dtype=jnp.float32))
    std = std.at[3].set(0.0)   # exercise the std==0 -> 1.0 replacement
    std_ref = jnp.where(std == 0.0, 1.0, std)

    # RELU + normalization path (force the Pallas kernel even at tiny shapes).
    # Tiny ragged case: batch*feat=64 not a multiple of 128 -> full-dim blocks.
    mod = BaseModulePallas(activation_type="RELU", reset_type="XAVIER",
                           normalize=True, min_pallas_elements=0)
    mod.set_normalization_params(mean, std)
    out = jax.block_until_ready(mod(x))
    ref = jnp.maximum((x - mean[None, :]) / std_ref[None, :], 0.0)
    assert jnp.allclose(out, ref, atol=1e-5, rtol=1e-5)

    # TANH path, no normalization (x-only kernel variant).
    mod2 = BaseModulePallas(activation_type="TANH", normalize=None,
                            min_pallas_elements=0)
    out2 = jax.block_until_ready(mod2(x))
    assert jnp.allclose(out2, jnp.tanh(x), atol=1e-5, rtol=1e-5)

    # Larger batch: exercises the lane-fold reshape ((1040,32)->(260,128),
    # mean tiled 4x), the 2-step parallel grid, and the ragged last block.
    xb = jax.random.normal(kb, (1040, hidden), dtype=jnp.float32)
    out3 = jax.block_until_ready(mod(xb))
    ref3 = jnp.maximum((xb - mean[None, :]) / std_ref[None, :], 0.0)
    assert jnp.allclose(out3, ref3, atol=1e-5, rtol=1e-5)

    print("KERNEL_OK")
</pallas_src>

<mosaic_0001>
module attributes {stable_mosaic.version = 11 : i64} {
  func.func @_norm_act_kernel(%arg0: i32, %arg1: memref<2x32xf32, #tpu.memory_space<vmem>>, %arg2: memref<1x32xf32, #tpu.memory_space<vmem>>, %arg3: memref<1x32xf32, #tpu.memory_space<vmem>>, %arg4: memref<2x32xf32, #tpu.memory_space<vmem>>) attributes {dimension_semantics = [#tpu.dimension_semantics<parallel>], iteration_bounds = array<i64: 1>, scalar_prefetch = 0 : i64, scratch_operands = 0 : i64, tpu.core_type = #tpu.core_type<tc>, window_params = [{transform_indices = @transform_0, window_bounds = array<i64: 2, 32>}, {pipeline_mode = #tpu.pipeline_mode<synchronous>, transform_indices = @transform_1, window_bounds = array<i64: 1, 32>}, {pipeline_mode = #tpu.pipeline_mode<synchronous>, transform_indices = @transform_2, window_bounds = array<i64: 1, 32>}, {transform_indices = @transform_3, window_bounds = array<i64: 2, 32>}]} {
    %c0 = arith.constant 0 : index
    %c0_0 = arith.constant 0 : index
    %0 = vector.load %arg1[%c0, %c0_0] : memref<2x32xf32, #tpu.memory_space<vmem>>, vector<2x32xf32>
    %c0_1 = arith.constant 0 : index
    %c0_2 = arith.constant 0 : index
    %1 = vector.load %arg2[%c0_1, %c0_2] : memref<1x32xf32, #tpu.memory_space<vmem>>, vector<1x32xf32>
    %2 = vector.broadcast %1 : vector<1x32xf32> to vector<2x32xf32>
    %3 = arith.subf %0, %2 : vector<2x32xf32>
    %c0_3 = arith.constant 0 : index
    %c0_4 = arith.constant 0 : index
    %4 = vector.load %arg3[%c0_3, %c0_4] : memref<1x32xf32, #tpu.memory_space<vmem>>, vector<1x32xf32>
    %5 = vector.broadcast %4 : vector<1x32xf32> to vector<2x32xf32>
    %6 = arith.mulf %3, %5 : vector<2x32xf32>
    %cst = arith.constant 0.000000e+00 : f32
    %7 = vector.broadcast %cst : f32 to vector<2x32xf32>
    %8 = arith.maximumf %6, %7 : vector<2x32xf32>
    %c0_5 = arith.constant 0 : index
    %c0_6 = arith.constant 0 : index
    %9 = vector.load %arg4[%c0_5, %c0_6] : memref<2x32xf32, #tpu.memory_space<vmem>>, vector<2x32xf32>
    tpu.vector_store %arg4[%c0_5, %c0_6], %8 {strides = array<i32>} : memref<2x32xf32, #tpu.memory_space<vmem>>, vector<2x32xf32>,
    return
  }
  func.func @transform_0(%arg0: i32) -> (i32, i32) {
    %c0_i32 = arith.constant 0 : i32
    %c0_i32_0 = arith.constant 0 : i32
    return %arg0, %c0_i32 : i32, i32
  }
  func.func @transform_1(%arg0: i32) -> (i32, i32) {
    %c0_i32 = arith.constant 0 : i32
    %c0_i32_0 = arith.constant 0 : i32
    %c0_i32_1 = arith.constant 0 : i32
    return %c0_i32, %c0_i32_0 : i32, i32
  }
  func.func @transform_2(%arg0: i32) -> (i32, i32) {
    %c0_i32 = arith.constant 0 : i32
    %c0_i32_0 = arith.constant 0 : i32
    %c0_i32_1 = arith.constant 0 : i32
    return %c0_i32, %c0_i32_0 : i32, i32
  }
  func.func @transform_3(%arg0: i32) -> (i32, i32) {
    %c0_i32 = arith.constant 0 : i32
    %c0_i32_0 = arith.constant 0 : i32
    return %arg0, %c0_i32 : i32, i32
  }
}

</mosaic_0001>

<bundles_post_ra>
// kernel: tpu_custom_call.1
= control target key start
LH: loop header
LB: loop body
LE: loop exit
PB: predicated region body
PF: predicated region fallthrough
CT: control target
= control target key end

     0   :  { %8 = vsyncpa [#allocation3], 0  ;;  %s166_s0 = inlined_call_operand.hbm [shape: f32[2,32], index: 0, kind: input, shape index: {}]   ;;  %s167_s1 = inlined_call_operand.vmem [shape: f32[1,32], index: 1, kind: input, shape index: {}]   ;;  %s168_s2 = inlined_call_operand.vmem [shape: f32[1,32], index: 2, kind: input, shape index: {}]   ;;  %s169_s3 = inlined_call_operand.hbm [shape: f32[2,32], index: 3, kind: output, shape index: {}]  }
   0x1   :  { %9 = vsyncpa [#allocation4], 0  ;;  %s114_s12 = smov [#allocation2]   ;;  %s66_s16 = scalar_lea.hbm %s166_s0, 32 }
   0x2   :  { %s16_s13 = sshll.u32 %s114_s12, 4  ;;  %p67_p0 = scmp.ne.s32.totalorder %s166_s0, %s66_s16  ;;  %s17_s13 = int_to_ptr.vmem [resolvable:$true] %s16_s13 }
   0x3   :  { %p70_p1 = scmp.lt.u32.totalorder %s66_s16, %s166_s0 }
   0x5   :  { %p72_p2 = pnand %p70_p1, %p67_p0 }
   0x7   :  { %75 = shalt.err (!%p72_p2)
}
   0x8   :  { %s76_s21 = scalar_lea.vmem %s17_s13, 32  ;;  %p81_p4 = scmp.lt.s32.totalorder %s17_s13, %s17_s13 }
   0x9   :  { %p77_p3 = scmp.ne.s32.totalorder %s17_s13, %s76_s21  ;;  %p82_p5 = scmp.lt.s32.totalorder %s76_s21, %s76_s21 }
   0xb   :  { %p83_p6 = por %p82_p5, %p81_p4 }
   0xd   :  { %p84_p7 = pnand %p83_p6, %p77_p3 }
   0xf   :  { %87 = shalt.err (!%p84_p7)
}
  0x10   :  { %19 = dma.hbm_to_vmem [thread:$0]  %s166_s0, 32, %s17_s13, [#allocation3]  }
  0x11   :  { %110 = dma.done.wait [#allocation3], 32  }
  0x12   :  { %111 = vsyncadd [#allocation3], 4294967264  ;;  %v27_v0 = vld [vmem:[#allocation2] sm:$0x3]  ;;  %s115_s28 = smov [#allocation5]   ;;  %vm45_vm0 = vcmask 254976  }
  0x13   :  { %v62_v1 = vld [vmem:[%s167_s1] ss:$0 sm:$0xff]  ;;  %s53_s29 = sshll.u32 %s115_s28, 4  ;;  %s54_s29 = int_to_ptr.vmem [resolvable:$true] %s53_s29 }
  0x14   :  { %v63_v2 = vld [vmem:[%s168_s2] ss:$0 sm:$0xff]  ;;  %v35_v3 = vsub.f32 %v27_v0, %v62_v1  ;;  %s88_s0 = scalar_lea.vmem %s54_s29, 32  ;;  %p93_p9 = scmp.lt.s32.totalorder %s54_s29, %s54_s29 }
  0x15   :  { %p89_p8 = scmp.ne.s32.totalorder %s54_s29, %s88_s0  ;;  %p94_p10 = scmp.lt.s32.totalorder %s88_s0, %s88_s0 }
  0x16   :  { %v43_v4 = vmul.f32 %v63_v2, %v35_v3 }
  0x17   :  { %p95_p11 = por %p94_p10, %p93_p9 }
  0x18   :  { %v44_v5 = vmax.f32 %v43_v4, 0.0 }
  0x19   :  { %p96_p12 = pnand %p95_p11, %p89_p8 }
  0x1a   :  { %46 = vst.msk [vmem:[#allocation5] sm:$0x3] %vm45_vm0, %v44_v5 }
  0x1b   :  { %99 = shalt.err (!%p96_p12)
}
  0x1c   :  { %s100_s4 = scalar_lea.hbm %s169_s3, 32 }
  0x1d   :  { %p101_p13 = scmp.ne.s32.totalorder %s169_s3, %s100_s4  ;;  %p104_p0 = scmp.lt.u32.totalorder %s100_s4, %s169_s3 }
  0x1f   :  { %p106_p1 = pnand %p104_p0, %p101_p13 }
  0x21   :  { %109 = shalt.err (!%p106_p1)
}
  0x22   :  { %56 = dma.vmem_to_hbm [thread:$0]  %s54_s29, 32, %s169_s3, [#allocation4]  }
  0x23   :  { %112 = dma.done.wait [#allocation4], 32  }
  0x24   :  { %113 = vsyncadd [#allocation4], 4294967264 }
  0x25   :  { %60 = vsyncpa [#allocation3], 1 }
  0x26   :  { %61 = vsyncpa [#allocation4], 1 }

</bundles_post_ra>
